<compile_context>
chip_gen: v7x
topology: tpu7x:2x2x1
jax: 0.10.0
libtpu: 0.0.40
codegen_flags: <defaults>
</compile_context>

<pallas_src>
import jax
import jax.numpy as jnp
from jax.experimental import pallas as pl
from jax.experimental.pallas import tpu as pltpu


# ---------------- small helpers ----------------------------------------------

def _round_up(x, m):
    return ((x + m - 1) // m) * m


def _vmem_limit_bytes(frac=0.85, fallback=48 << 20):
    """~85% of physical VMEM (108 MiB on v5e/v6e, 54 MiB on v7x); safe fallback."""
    try:
        info = pltpu.get_tpu_info()
        cap = getattr(info, "vmem_capacity_bytes", None)
        if cap:
            return int(cap * frac)
    except Exception:
        pass
    return fallback


def _pick_batch_block(B, T, D, budget_bytes):
    """Largest divisor Bb of B whose per-step activation VMEM fits the budget."""
    def est(Bb):
        # residual in+out (double-buffered) + f32 temporaries (qkv/scores/h)
        return Bb * T * 4 * (4 * D      # x in + y out blocks
                             + 3 * D    # qkv
                             + 2 * T    # scores + weights
                             + 4 * D)   # FFN hidden
    for Bb in range(B, 0, -1):
        if B % Bb == 0 and est(Bb) <= budget_bytes:
            return Bb
    return 1


# ---------------- in-kernel math helpers --------------------------------------

def _layernorm(x, shift, bias, eps=1e-5):
    mean = jnp.mean(x, axis=-1, keepdims=True)
    var = jnp.mean((x - mean) ** 2, axis=-1, keepdims=True)   # unbiased=False
    return (x - mean) / jnp.sqrt(var + eps) * shift + bias


def _gelu(x):
    return 0.5 * x * (1.0 + jnp.tanh(jnp.sqrt(2.0 / jnp.pi)
                                     * (x + 0.044715 * x ** 3)))


# ---------------- fused all-layers transformer kernel -------------------------
# grid = (B//Bb, L).  One grid step = one layer applied to one batch group.
# The (Bb, T, D) f32 residual stream is the output block; its index map
# ignores the layer axis so it stays resident in VMEM across layers.

def _gpt_blocks_kernel(x_ref, vecs_ref, wqkv_ref, bqkv_ref, wo_ref,
                       w1_ref, b1_ref, w2_ref, y_ref):
    l = pl.program_id(1)
    n_layers = pl.num_programs(1)

    # Layer 0 of each batch group: seed the VMEM-resident activation.
    @pl.when(l == 0)
    def _():
        y_ref[...] = x_ref[...]

    x = y_ref[...]                                 # (Bb, T, D) f32 residual
    Bb, T, D = x.shape

    vecs = vecs_ref[0]                             # (8, D) packed vectors
    ln1_s, ln1_b = vecs[0], vecs[1]
    ln2_s, ln2_b = vecs[2], vecs[3]
    bo, b2 = vecs[4], vecs[5]
    fn_s, fn_b = vecs[6], vecs[7]                  # final-norm params

    # --- attention branch ----------------------------------------------------
    shortcut = x
    xn = _layernorm(x, ln1_s, ln1_b).reshape(Bb * T, D)
    qkv = jnp.dot(xn.astype(jnp.bfloat16), wqkv_ref[0],
                  preferred_element_type=jnp.float32) + bqkv_ref[0]  # (Bb*T,3D)
    # NOTE: keep D a multiple of 128 (256 preferred on v6e/v7x) in production
    # so these lane slices are tile-aligned and matmuls fill full MXU tiles.
    q = (qkv[:, :D] * (1.0 / (D ** 0.5))).reshape(Bb, T, D)   # fold 1/sqrt(d)
    k = qkv[:, D:2 * D].reshape(Bb, T, D)
    v = qkv[:, 2 * D:].reshape(Bb, T, D)

    scores = jnp.einsum('bqd,bkd->bqk',
                        q.astype(jnp.bfloat16), k.astype(jnp.bfloat16),
                        preferred_element_type=jnp.float32)          # (Bb,T,T)

    # causal mask built in-kernel (no (T,T) HBM mask DMA); large finite neg.
    row = jax.lax.broadcasted_iota(jnp.int32, (T, T), 0)
    col = jax.lax.broadcasted_iota(jnp.int32, (T, T), 1)
    scores = jnp.where(col > row, -1e30, scores)

    m = jnp.max(scores, axis=-1, keepdims=True)
    e = jnp.exp(scores - m)
    attw = e / jnp.sum(e, axis=-1, keepdims=True)          # exact softmax

    ctx = jnp.einsum('bqk,bkd->bqd',
                     attw.astype(jnp.bfloat16), v.astype(jnp.bfloat16),
                     preferred_element_type=jnp.float32).reshape(Bb * T, D)
    att_out = jnp.dot(ctx.astype(jnp.bfloat16), wo_ref[0],
                      preferred_element_type=jnp.float32) + bo
    x = att_out.reshape(Bb, T, D) + shortcut               # dropout(0) = id

    # --- feed-forward branch ---------------------------------------------------
    shortcut = x
    xn2 = _layernorm(x, ln2_s, ln2_b).reshape(Bb * T, D)
    h = _gelu(jnp.dot(xn2.astype(jnp.bfloat16), w1_ref[0],
                      preferred_element_type=jnp.float32) + b1_ref[0])
    y = jnp.dot(h.astype(jnp.bfloat16), w2_ref[0],
                preferred_element_type=jnp.float32) + b2
    out = y.reshape(Bb, T, D) + shortcut

    # Final LayerNorm hoisted into the last layer step, so the vocab head is a
    # pure matmul per tile.
    @pl.when(l == n_layers - 1)
    def _():
        y_ref[...] = _layernorm(out, fn_s, fn_b)

    @pl.when(l < n_layers - 1)
    def _():
        y_ref[...] = out

    # TODO(synk): for T >= ~2k, flash-style (T//TQ, T//TK) tiling of the
    # attention and blocking of the FFN hidden dim would bound the (T,T) /
    # (T,4D) f32 temporaries; for D >= ~1024 on v7x, split each layer into an
    # attention-weight phase and an FFN-weight phase (grid=(B//Bb, 2L)).


def gpt_blocks(x, p, *, vmem_limit):
    B, T, D = x.shape
    L = p['wqkv'].shape[0]
    H = p['w1'].shape[-1]
    D3 = 3 * D

    Bb = _pick_batch_block(B, T, D, vmem_limit // 4)
    Bpad = _round_up(B, Bb)
    if Bpad != B:
        x = jnp.pad(x, ((0, Bpad - B), (0, 0), (0, 0)))

    def lay(s1, s2):
        # per-layer parameter: block indexed by the layer grid axis only
        return pl.BlockSpec((1, s1, s2), lambda g, l: (l, 0, 0))

    out = pl.pallas_call(
        _gpt_blocks_kernel,
        out_shape=jax.ShapeDtypeStruct((Bpad, T, D), jnp.float32),
        grid=(Bpad // Bb, L),
        in_specs=[
            pl.BlockSpec((Bb, T, D), lambda g, l: (g, 0, 0)),  # residual seed
            lay(8, D),       # packed: ln1_s, ln1_b, ln2_s, ln2_b, bo, b2, fn_s, fn_b
            lay(D, D3),      # fused Wqkv (bf16)
            lay(1, D3),      # fused qkv bias
            lay(D, D),       # Wo (bf16)
            lay(D, H),       # W1 (bf16)
            lay(1, H),       # b1
            lay(H, D),       # W2 (bf16)
        ],
        out_specs=pl.BlockSpec((Bb, T, D), lambda g, l: (g, 0, 0)),
        compiler_params=pltpu.CompilerParams(
            dimension_semantics=("parallel", "arbitrary"),
            vmem_limit_bytes=vmem_limit),
    )(x, p['vecs'], p['wqkv'], p['bqkv'], p['wo'], p['w1'], p['b1'], p['w2'])

    return out[:B] if Bpad != B else out


# ---------------- vocab-tiled output head (final LN already applied) ----------

def _head_kernel(x_ref, w_ref, o_ref):
    Bb, T, D = x_ref.shape
    x2 = x_ref[...].reshape(Bb * T, D).astype(jnp.bfloat16)
    y = jnp.dot(x2, w_ref[...], preferred_element_type=jnp.float32)
    o_ref[...] = y.reshape(Bb, T, -1).astype(o_ref.dtype)


def vocab_head(x, w_out, *, vmem_limit, logits_dtype=jnp.float32):
    B, T, D = x.shape
    V = w_out.shape[1]

    # lane-dense vocab tiles; always pad V so the head weight never becomes a
    # single (D, V) block (e.g. GPT-2 50257 -> 50688 with TV=512).
    TV = 512 if V >= 512 else _round_up(V, 128)
    Vpad = _round_up(V, TV)
    if Vpad != V:
        w_out = jnp.pad(w_out, ((0, 0), (0, Vpad - V)))

    Bb = _pick_batch_block(B, T, D, vmem_limit // 4)
    Bpad = _round_up(B, Bb)
    if Bpad != B:
        x = jnp.pad(x, ((0, Bpad - B), (0, 0), (0, 0)))

    logits = pl.pallas_call(
        _head_kernel,
        out_shape=jax.ShapeDtypeStruct((Bpad, T, Vpad), logits_dtype),
        grid=(Bpad // Bb, Vpad // TV),
        in_specs=[
            pl.BlockSpec((Bb, T, D), lambda g, v: (g, 0, 0)),
            pl.BlockSpec((D, TV), lambda g, v: (0, v)),
        ],
        out_specs=pl.BlockSpec((Bb, T, TV), lambda g, v: (g, 0, v)),
        compiler_params=pltpu.CompilerParams(
            dimension_semantics=("parallel", "parallel"),
            vmem_limit_bytes=vmem_limit),
    )(x, w_out)

    return logits[:B, :, :V]


# ---------------- parameter init + full-model glue -----------------------------

def init_params(key, cfg):
    D = cfg['emb_dim']
    V = cfg['vocab_size']
    C = cfg['context_length']
    H = 4 * D
    L = cfg['n_layers']
    keys = jax.random.split(key, 11)

    def w_bf16(k, shape):      # matmul weights live in bf16 in HBM
        return (jax.random.normal(k, shape, jnp.float32) * 0.02
                ).astype(jnp.bfloat16)

    def b_f32(k, shape):       # biases stay f32 (added to f32 accumulators)
        return jax.random.normal(k, shape, jnp.float32) * 0.02

    bo = b_f32(keys[6], (L, D))
    b2 = b_f32(keys[10], (L, D))
    # packed per-layer vectors (one (8, D) sublane tile per layer):
    # [ln1_shift, ln1_bias, ln2_shift, ln2_bias, bo, b2, final_shift, final_bias]
    vecs = jnp.stack([
        jnp.ones((L, D), jnp.float32),                    # ln1 shift
        jnp.zeros((L, D), jnp.float32),                   # ln1 bias
        jnp.ones((L, D), jnp.float32),                    # ln2 shift
        jnp.zeros((L, D), jnp.float32),                   # ln2 bias
        bo,                                               # attn out-proj bias
        b2,                                               # FFN out bias
        jnp.ones((L, D), jnp.float32),                    # final-norm shift
        jnp.zeros((L, D), jnp.float32),                   # final-norm bias
    ], axis=1)                                            # (L, 8, D)

    return {
        'tok_emb': jax.random.normal(keys[0], (V, D), jnp.float32) * 0.02,
        'pos_emb': jax.random.normal(keys[1], (C, D), jnp.float32) * 0.02,
        'out_head': w_bf16(keys[2], (D, V)),
        'vecs': vecs,
        'wqkv': w_bf16(keys[3], (L, D, 3 * D)),   # fused W_query|W_keys|W_values
        'bqkv': b_f32(keys[4], (L, 1, 3 * D)),
        'wo': w_bf16(keys[5], (L, D, D)),
        'w1': w_bf16(keys[7], (L, D, H)),
        'b1': b_f32(keys[8], (L, 1, H)),
        'w2': w_bf16(keys[9], (L, H, D)),
    }


def gpt_forward(in_idx, params, *, logits_dtype=jnp.float32):
    B, T = in_idx.shape
    vmem_limit = _vmem_limit_bytes()
    # TODO(synk): the token/positional embedding gather could be fused into
    # the blocks kernel (scalar-prefetched ids + Element-indexed BlockSpec);
    # kept as XLA glue here.
    tok = params['tok_emb'][in_idx]           # (B, T, D)
    pos = params['pos_emb'][:T]               # (T, D)
    x = tok + pos                             # dropout(0) = identity
    x = gpt_blocks(x, params, vmem_limit=vmem_limit)   # all blocks + final LN
    return vocab_head(x, params['out_head'],
                      vmem_limit=vmem_limit, logits_dtype=logits_dtype)


if __name__ == "__main__":
    cfg = dict(vocab_size=64, context_length=16, emb_dim=32, num_head=4,
               n_layers=2, dropout=0.0, qkv_bias=False)
    key = jax.random.PRNGKey(0)
    pkey, ikey = jax.random.split(key)
    params = init_params(pkey, cfg)

    B, T = 2, 8
    in_idx = jax.random.randint(ikey, (B, T), 0, cfg['vocab_size'],
                                dtype=jnp.int32)

    logits = gpt_forward(in_idx, params)
    logits = jax.block_until_ready(logits)
    assert logits.shape == (B, T, cfg['vocab_size'])
    assert bool(jnp.all(jnp.isfinite(logits)))
    print("KERNEL_OK")
</pallas_src>

<mosaic_0001>
module attributes {stable_mosaic.version = 11 : i64} {
  func.func @_gpt_blocks_kernel(%arg0: i32, %arg1: i32, %arg2: memref<2x8x32xf32, #tpu.memory_space<vmem>>, %arg3: memref<1x8x32xf32, #tpu.memory_space<vmem>>, %arg4: memref<1x32x96xbf16, #tpu.memory_space<vmem>>, %arg5: memref<1x1x96xf32, #tpu.memory_space<vmem>>, %arg6: memref<1x32x32xbf16, #tpu.memory_space<vmem>>, %arg7: memref<1x32x128xbf16, #tpu.memory_space<vmem>>, %arg8: memref<1x1x128xf32, #tpu.memory_space<vmem>>, %arg9: memref<1x128x32xbf16, #tpu.memory_space<vmem>>, %arg10: memref<2x8x32xf32, #tpu.memory_space<vmem>>) attributes {dimension_semantics = [#tpu.dimension_semantics<parallel>, #tpu.dimension_semantics<arbitrary>], iteration_bounds = array<i64: 1, 2>, scalar_prefetch = 0 : i64, scratch_operands = 0 : i64, tpu.core_type = #tpu.core_type<tc>, window_params = [{transform_indices = @transform_0, window_bounds = array<i64: 2, 8, 32>}, {transform_indices = @transform_1, window_bounds = array<i64: 1, 8, 32>}, {transform_indices = @transform_2, window_bounds = array<i64: 1, 32, 96>}, {transform_indices = @transform_3, window_bounds = array<i64: 1, 1, 96>}, {transform_indices = @transform_4, window_bounds = array<i64: 1, 32, 32>}, {transform_indices = @transform_5, window_bounds = array<i64: 1, 32, 128>}, {transform_indices = @transform_6, window_bounds = array<i64: 1, 1, 128>}, {transform_indices = @transform_7, window_bounds = array<i64: 1, 128, 32>}, {transform_indices = @transform_8, window_bounds = array<i64: 2, 8, 32>}]} {
    %c0_i32 = arith.constant 0 : i32
    %0 = arith.cmpi eq, %arg1, %c0_i32 : i32
    %1 = arith.extui %0 : i1 to i32
    %c0_i32_0 = arith.constant 0 : i32
    %2 = arith.cmpi ne, %1, %c0_i32_0 : i32
    scf.if %2 {
      %c0_50 = arith.constant 0 : index
      %c0_51 = arith.constant 0 : index
      %c0_52 = arith.constant 0 : index
      %157 = vector.load %arg2[%c0_50, %c0_51, %c0_52] : memref<2x8x32xf32, #tpu.memory_space<vmem>>, vector<2x8x32xf32>
      %c0_53 = arith.constant 0 : index
      %c0_54 = arith.constant 0 : index
      %c0_55 = arith.constant 0 : index
      %158 = vector.load %arg10[%c0_53, %c0_54, %c0_55] : memref<2x8x32xf32, #tpu.memory_space<vmem>>, vector<2x8x32xf32>
      tpu.vector_store %arg10[%c0_53, %c0_54, %c0_55], %157 {strides = array<i32>} : memref<2x8x32xf32, #tpu.memory_space<vmem>>, vector<2x8x32xf32>,
    } else {
    }
    %c0 = arith.constant 0 : index
    %c0_1 = arith.constant 0 : index
    %c0_2 = arith.constant 0 : index
    %3 = vector.load %arg10[%c0, %c0_1, %c0_2] : memref<2x8x32xf32, #tpu.memory_space<vmem>>, vector<2x8x32xf32>
    %c0_3 = arith.constant 0 : index
    %c0_4 = arith.constant 0 : index
    %c0_5 = arith.constant 0 : index
    %4 = vector.load %arg3[%c0_3, %c0_4, %c0_5] : memref<1x8x32xf32, #tpu.memory_space<vmem>>, vector<1x8x32xf32>
    %5 = vector.shape_cast %4 : vector<1x8x32xf32> to vector<8x32xf32>
    %6 = vector.extract_strided_slice %5 {offsets = [0, 0], sizes = [1, 32], strides = [1, 1]} : vector<8x32xf32> to vector<1x32xf32>
    %7 = vector.shape_cast %6 : vector<1x32xf32> to vector<32xf32>
    %8 = vector.extract_strided_slice %5 {offsets = [1, 0], sizes = [1, 32], strides = [1, 1]} : vector<8x32xf32> to vector<1x32xf32>
    %9 = vector.shape_cast %8 : vector<1x32xf32> to vector<32xf32>
    %10 = vector.extract_strided_slice %5 {offsets = [2, 0], sizes = [1, 32], strides = [1, 1]} : vector<8x32xf32> to vector<1x32xf32>
    %11 = vector.shape_cast %10 : vector<1x32xf32> to vector<32xf32>
    %12 = vector.extract_strided_slice %5 {offsets = [3, 0], sizes = [1, 32], strides = [1, 1]} : vector<8x32xf32> to vector<1x32xf32>
    %13 = vector.shape_cast %12 : vector<1x32xf32> to vector<32xf32>
    %14 = vector.extract_strided_slice %5 {offsets = [4, 0], sizes = [1, 32], strides = [1, 1]} : vector<8x32xf32> to vector<1x32xf32>
    %15 = vector.shape_cast %14 : vector<1x32xf32> to vector<32xf32>
    %16 = vector.extract_strided_slice %5 {offsets = [5, 0], sizes = [1, 32], strides = [1, 1]} : vector<8x32xf32> to vector<1x32xf32>
    %17 = vector.shape_cast %16 : vector<1x32xf32> to vector<32xf32>
    %18 = vector.extract_strided_slice %5 {offsets = [6, 0], sizes = [1, 32], strides = [1, 1]} : vector<8x32xf32> to vector<1x32xf32>
    %19 = vector.shape_cast %18 : vector<1x32xf32> to vector<32xf32>
    %20 = vector.extract_strided_slice %5 {offsets = [7, 0], sizes = [1, 32], strides = [1, 1]} : vector<8x32xf32> to vector<1x32xf32>
    %21 = vector.shape_cast %20 : vector<1x32xf32> to vector<32xf32>
    %cst = arith.constant dense<0.000000e+00> : vector<2x8xf32>
    %22 = vector.multi_reduction <add>, %3, %cst [2] : vector<2x8x32xf32> to vector<2x8xf32>
    %23 = vector.shape_cast %22 : vector<2x8xf32> to vector<2x8x1xf32>
    %cst_6 = arith.constant 3.200000e+01 : f32
    %24 = vector.broadcast %cst_6 : f32 to vector<2x8x1xf32>
    %25 = arith.divf %23, %24 : vector<2x8x1xf32>
    %26 = vector.broadcast %25 : vector<2x8x1xf32> to vector<2x8x32xf32>
    %27 = arith.subf %3, %26 : vector<2x8x32xf32>
    %28 = arith.mulf %27, %27 : vector<2x8x32xf32>
    %cst_7 = arith.constant dense<0.000000e+00> : vector<2x8xf32>
    %29 = vector.multi_reduction <add>, %28, %cst_7 [2] : vector<2x8x32xf32> to vector<2x8xf32>
    %30 = vector.shape_cast %29 : vector<2x8xf32> to vector<2x8x1xf32>
    %cst_8 = arith.constant 3.200000e+01 : f32
    %31 = vector.broadcast %cst_8 : f32 to vector<2x8x1xf32>
    %32 = arith.divf %30, %31 : vector<2x8x1xf32>
    %33 = vector.broadcast %25 : vector<2x8x1xf32> to vector<2x8x32xf32>
    %34 = arith.subf %3, %33 : vector<2x8x32xf32>
    %cst_9 = arith.constant 9.99999974E-6 : f32
    %35 = vector.broadcast %cst_9 : f32 to vector<2x8x1xf32>
    %36 = arith.addf %32, %35 : vector<2x8x1xf32>
    %37 = math.sqrt %36 : vector<2x8x1xf32>
    %38 = vector.broadcast %37 : vector<2x8x1xf32> to vector<2x8x32xf32>
    %39 = arith.divf %34, %38 : vector<2x8x32xf32>
    %40 = vector.shape_cast %7 : vector<32xf32> to vector<1x1x32xf32>
    %41 = vector.broadcast %40 : vector<1x1x32xf32> to vector<2x8x32xf32>
    %42 = arith.mulf %39, %41 : vector<2x8x32xf32>
    %43 = vector.shape_cast %9 : vector<32xf32> to vector<1x1x32xf32>
    %44 = vector.broadcast %43 : vector<1x1x32xf32> to vector<2x8x32xf32>
    %45 = arith.addf %42, %44 : vector<2x8x32xf32>
    %46 = vector.shape_cast %45 : vector<2x8x32xf32> to vector<16x32xf32>
    %47 = arith.truncf %46 : vector<16x32xf32> to vector<16x32xbf16>
    %c0_10 = arith.constant 0 : index
    %c0_11 = arith.constant 0 : index
    %c0_12 = arith.constant 0 : index
    %48 = vector.load %arg4[%c0_10, %c0_11, %c0_12] : memref<1x32x96xbf16, #tpu.memory_space<vmem>>, vector<1x32x96xbf16>
    %49 = vector.shape_cast %48 : vector<1x32x96xbf16> to vector<32x96xbf16>
    %cst_13 = arith.constant dense<0.000000e+00> : vector<16x96xf32>
    %50 = tpu.matmul %47, %49, %cst_13 {dimension_numbers = #tpu.dot_dimension_numbers<[1], [0], [0], [1], [0, 0, 1, 1], [], []>} : vector<16x32xbf16>, vector<32x96xbf16>, vector<16x96xf32> -> vector<16x96xf32>
    %c0_14 = arith.constant 0 : index
    %c0_15 = arith.constant 0 : index
    %c0_16 = arith.constant 0 : index
    %51 = vector.load %arg5[%c0_14, %c0_15, %c0_16] : memref<1x1x96xf32, #tpu.memory_space<vmem>>, vector<1x1x96xf32>
    %52 = vector.shape_cast %51 : vector<1x1x96xf32> to vector<1x96xf32>
    %53 = vector.broadcast %52 : vector<1x96xf32> to vector<16x96xf32>
    %54 = arith.addf %50, %53 : vector<16x96xf32>
    %55 = vector.extract_strided_slice %54 {offsets = [0, 0], sizes = [16, 32], strides = [1, 1]} : vector<16x96xf32> to vector<16x32xf32>
    %cst_17 = arith.constant 0.176776692 : f32
    %56 = vector.broadcast %cst_17 : f32 to vector<16x32xf32>
    %57 = arith.mulf %55, %56 : vector<16x32xf32>
    %58 = vector.shape_cast %57 : vector<16x32xf32> to vector<2x8x32xf32>
    %59 = vector.extract_strided_slice %54 {offsets = [0, 32], sizes = [16, 32], strides = [1, 1]} : vector<16x96xf32> to vector<16x32xf32>
    %60 = vector.shape_cast %59 : vector<16x32xf32> to vector<2x8x32xf32>
    %61 = vector.extract_strided_slice %54 {offsets = [0, 64], sizes = [16, 32], strides = [1, 1]} : vector<16x96xf32> to vector<16x32xf32>
    %62 = vector.shape_cast %61 : vector<16x32xf32> to vector<2x8x32xf32>
    %63 = arith.truncf %58 : vector<2x8x32xf32> to vector<2x8x32xbf16>
    %64 = arith.truncf %60 : vector<2x8x32xf32> to vector<2x8x32xbf16>
    "tpu.trace_start"() <{level = 10 : i32, message = "bqd,bkd->bqk"}> : () -> ()
    %cst_18 = arith.constant dense<0.000000e+00> : vector<2x8x8xf32>
    %65 = tpu.matmul %63, %64, %cst_18 {dimension_numbers = #tpu.dot_dimension_numbers<[2], [2], [1], [1], [0, 0, 0, 1, 1, 1], [0], [0]>} : vector<2x8x32xbf16>, vector<2x8x32xbf16>, vector<2x8x8xf32> -> vector<2x8x8xf32>
    "tpu.trace_stop"() : () -> ()
    %66 = tpu.iota {dimensions = array<i32: 0>} : vector<8x8xi32>
    %67 = tpu.iota {dimensions = array<i32: 1>} : vector<8x8xi32>
    %68 = arith.cmpi sgt, %67, %66 : vector<8x8xi32>
    %cst_19 = arith.constant -1.000000e+30 : f32
    %69 = vector.shape_cast %68 : vector<8x8xi1> to vector<1x8x8xi1>
    %70 = vector.broadcast %69 : vector<1x8x8xi1> to vector<2x8x8xi1>
    %71 = vector.broadcast %cst_19 : f32 to vector<2x8x8xf32>
    %72 = arith.select %70, %71, %65 : vector<2x8x8xi1>, vector<2x8x8xf32>
    %cst_20 = arith.constant dense<0xFF800000> : vector<2x8xf32>
    %73 = vector.multi_reduction <maximumf>, %72, %cst_20 [2] : vector<2x8x8xf32> to vector<2x8xf32>
    %74 = vector.shape_cast %73 : vector<2x8xf32> to vector<2x8x1xf32>
    %75 = vector.broadcast %74 : vector<2x8x1xf32> to vector<2x8x8xf32>
    %76 = arith.subf %72, %75 : vector<2x8x8xf32>
    %77 = math.exp %76 : vector<2x8x8xf32>
    %cst_21 = arith.constant dense<0.000000e+00> : vector<2x8xf32>
    %78 = vector.multi_reduction <add>, %77, %cst_21 [2] : vector<2x8x8xf32> to vector<2x8xf32>
    %79 = vector.shape_cast %78 : vector<2x8xf32> to vector<2x8x1xf32>
    %80 = vector.broadcast %79 : vector<2x8x1xf32> to vector<2x8x8xf32>
    %81 = arith.divf %77, %80 : vector<2x8x8xf32>
    %82 = arith.truncf %81 : vector<2x8x8xf32> to vector<2x8x8xbf16>
    %83 = arith.truncf %62 : vector<2x8x32xf32> to vector<2x8x32xbf16>
    "tpu.trace_start"() <{level = 10 : i32, message = "bqk,bkd->bqd"}> : () -> ()
    %cst_22 = arith.constant dense<0.000000e+00> : vector<2x8x32xf32>
    %84 = tpu.matmul %82, %83, %cst_22 {dimension_numbers = #tpu.dot_dimension_numbers<[2], [1], [1], [2], [0, 0, 0, 1, 1, 2], [0], [0]>} : vector<2x8x8xbf16>, vector<2x8x32xbf16>, vector<2x8x32xf32> -> vector<2x8x32xf32>
    "tpu.trace_stop"() : () -> ()
    %85 = vector.shape_cast %84 : vector<2x8x32xf32> to vector<16x32xf32>
    %86 = arith.truncf %85 : vector<16x32xf32> to vector<16x32xbf16>
    %c0_23 = arith.constant 0 : index
    %c0_24 = arith.constant 0 : index
    %c0_25 = arith.constant 0 : index
    %87 = vector.load %arg6[%c0_23, %c0_24, %c0_25] : memref<1x32x32xbf16, #tpu.memory_space<vmem>>, vector<1x32x32xbf16>
    %88 = vector.shape_cast %87 : vector<1x32x32xbf16> to vector<32x32xbf16>
    %cst_26 = arith.constant dense<0.000000e+00> : vector<16x32xf32>
    %89 = tpu.matmul %86, %88, %cst_26 {dimension_numbers = #tpu.dot_dimension_numbers<[1], [0], [0], [1], [0, 0, 1, 1], [], []>} : vector<16x32xbf16>, vector<32x32xbf16>, vector<16x32xf32> -> vector<16x32xf32>
    %90 = vector.shape_cast %15 : vector<32xf32> to vector<1x32xf32>
    %91 = vector.broadcast %90 : vector<1x32xf32> to vector<16x32xf32>
    %92 = arith.addf %89, %91 : vector<16x32xf32>
    %93 = vector.shape_cast %92 : vector<16x32xf32> to vector<2x8x32xf32>
    %94 = arith.addf %93, %3 : vector<2x8x32xf32>
    %cst_27 = arith.constant dense<0.000000e+00> : vector<2x8xf32>
    %95 = vector.multi_reduction <add>, %94, %cst_27 [2] : vector<2x8x32xf32> to vector<2x8xf32>
    %96 = vector.shape_cast %95 : vector<2x8xf32> to vector<2x8x1xf32>
    %cst_28 = arith.constant 3.200000e+01 : f32
    %97 = vector.broadcast %cst_28 : f32 to vector<2x8x1xf32>
    %98 = arith.divf %96, %97 : vector<2x8x1xf32>
    %99 = vector.broadcast %98 : vector<2x8x1xf32> to vector<2x8x32xf32>
    %100 = arith.subf %94, %99 : vector<2x8x32xf32>
    %101 = arith.mulf %100, %100 : vector<2x8x32xf32>
    %cst_29 = arith.constant dense<0.000000e+00> : vector<2x8xf32>
    %102 = vector.multi_reduction <add>, %101, %cst_29 [2] : vector<2x8x32xf32> to vector<2x8xf32>
    %103 = vector.shape_cast %102 : vector<2x8xf32> to vector<2x8x1xf32>
    %cst_30 = arith.constant 3.200000e+01 : f32
    %104 = vector.broadcast %cst_30 : f32 to vector<2x8x1xf32>
    %105 = arith.divf %103, %104 : vector<2x8x1xf32>
    %106 = vector.broadcast %98 : vector<2x8x1xf32> to vector<2x8x32xf32>
    %107 = arith.subf %94, %106 : vector<2x8x32xf32>
    %cst_31 = arith.constant 9.99999974E-6 : f32
    %108 = vector.broadcast %cst_31 : f32 to vector<2x8x1xf32>
    %109 = arith.addf %105, %108 : vector<2x8x1xf32>
    %110 = math.sqrt %109 : vector<2x8x1xf32>
    %111 = vector.broadcast %110 : vector<2x8x1xf32> to vector<2x8x32xf32>
    %112 = arith.divf %107, %111 : vector<2x8x32xf32>
    %113 = vector.shape_cast %11 : vector<32xf32> to vector<1x1x32xf32>
    %114 = vector.broadcast %113 : vector<1x1x32xf32> to vector<2x8x32xf32>
    %115 = arith.mulf %112, %114 : vector<2x8x32xf32>
    %116 = vector.shape_cast %13 : vector<32xf32> to vector<1x1x32xf32>
    %117 = vector.broadcast %116 : vector<1x1x32xf32> to vector<2x8x32xf32>
    %118 = arith.addf %115, %117 : vector<2x8x32xf32>
    %119 = vector.shape_cast %118 : vector<2x8x32xf32> to vector<16x32xf32>
    %120 = arith.truncf %119 : vector<16x32xf32> to vector<16x32xbf16>
    %c0_32 = arith.constant 0 : index
    %c0_33 = arith.constant 0 : index
    %c0_34 = arith.constant 0 : index
    %121 = vector.load %arg7[%c0_32, %c0_33, %c0_34] : memref<1x32x128xbf16, #tpu.memory_space<vmem>>, vector<1x32x128xbf16>
    %122 = vector.shape_cast %121 : vector<1x32x128xbf16> to vector<32x128xbf16>
    %cst_35 = arith.constant dense<0.000000e+00> : vector<16x128xf32>
    %123 = tpu.matmul %120, %122, %cst_35 {dimension_numbers = #tpu.dot_dimension_numbers<[1], [0], [0], [1], [0, 0, 1, 1], [], []>} : vector<16x32xbf16>, vector<32x128xbf16>, vector<16x128xf32> -> vector<16x128xf32>
    %c0_36 = arith.constant 0 : index
    %c0_37 = arith.constant 0 : index
    %c0_38 = arith.constant 0 : index
    %124 = vector.load %arg8[%c0_36, %c0_37, %c0_38] : memref<1x1x128xf32, #tpu.memory_space<vmem>>, vector<1x1x128xf32>
    %125 = vector.shape_cast %124 : vector<1x1x128xf32> to vector<1x128xf32>
    %126 = vector.broadcast %125 : vector<1x128xf32> to vector<16x128xf32>
    %127 = arith.addf %123, %126 : vector<16x128xf32>
    %cst_39 = arith.constant 5.000000e-01 : f32
    %128 = vector.broadcast %cst_39 : f32 to vector<16x128xf32>
    %129 = arith.mulf %128, %127 : vector<16x128xf32>
    %cst_40 = arith.constant 0.636619746 : f32
    %130 = math.sqrt %cst_40 : f32
    %131 = arith.mulf %127, %127 : vector<16x128xf32>
    %132 = arith.mulf %127, %131 : vector<16x128xf32>
    %cst_41 = arith.constant 4.471500e-02 : f32
    %133 = vector.broadcast %cst_41 : f32 to vector<16x128xf32>
    %134 = arith.mulf %133, %132 : vector<16x128xf32>
    %135 = arith.addf %127, %134 : vector<16x128xf32>
    %136 = vector.broadcast %130 : f32 to vector<16x128xf32>
    %137 = arith.mulf %136, %135 : vector<16x128xf32>
    %138 = math.tanh %137 : vector<16x128xf32>
    %cst_42 = arith.constant 1.000000e+00 : f32
    %139 = vector.broadcast %cst_42 : f32 to vector<16x128xf32>
    %140 = arith.addf %139, %138 : vector<16x128xf32>
    %141 = arith.mulf %129, %140 : vector<16x128xf32>
    %142 = arith.truncf %141 : vector<16x128xf32> to vector<16x128xbf16>
    %c0_43 = arith.constant 0 : index
    %c0_44 = arith.constant 0 : index
    %c0_45 = arith.constant 0 : index
    %143 = vector.load %arg9[%c0_43, %c0_44, %c0_45] : memref<1x128x32xbf16, #tpu.memory_space<vmem>>, vector<1x128x32xbf16>
    %144 = vector.shape_cast %143 : vector<1x128x32xbf16> to vector<128x32xbf16>
    %cst_46 = arith.constant dense<0.000000e+00> : vector<16x32xf32>
    %145 = tpu.matmul %142, %144, %cst_46 {dimension_numbers = #tpu.dot_dimension_numbers<[1], [0], [0], [1], [0, 0, 1, 1], [], []>} : vector<16x128xbf16>, vector<128x32xbf16>, vector<16x32xf32> -> vector<16x32xf32>
    %146 = vector.shape_cast %17 : vector<32xf32> to vector<1x32xf32>
    %147 = vector.broadcast %146 : vector<1x32xf32> to vector<16x32xf32>
    %148 = arith.addf %145, %147 : vector<16x32xf32>
    %149 = vector.shape_cast %148 : vector<16x32xf32> to vector<2x8x32xf32>
    %150 = arith.addf %149, %94 : vector<2x8x32xf32>
    %c1_i32 = arith.constant 1 : i32
    %151 = arith.cmpi eq, %arg1, %c1_i32 : i32
    %152 = arith.extui %151 : i1 to i32
    %c0_i32_47 = arith.constant 0 : i32
    %153 = arith.cmpi ne, %152, %c0_i32_47 : i32
    scf.if %153 {
      %cst_50 = arith.constant dense<0.000000e+00> : vector<2x8xf32>
      %157 = vector.multi_reduction <add>, %150, %cst_50 [2] : vector<2x8x32xf32> to vector<2x8xf32>
      %158 = vector.shape_cast %157 : vector<2x8xf32> to vector<2x8x1xf32>
      %cst_51 = arith.constant 3.200000e+01 : f32
      %159 = vector.broadcast %cst_51 : f32 to vector<2x8x1xf32>
      %160 = arith.divf %158, %159 : vector<2x8x1xf32>
      %161 = vector.broadcast %160 : vector<2x8x1xf32> to vector<2x8x32xf32>
      %162 = arith.subf %150, %161 : vector<2x8x32xf32>
      %163 = arith.mulf %162, %162 : vector<2x8x32xf32>
      %cst_52 = arith.constant dense<0.000000e+00> : vector<2x8xf32>
      %164 = vector.multi_reduction <add>, %163, %cst_52 [2] : vector<2x8x32xf32> to vector<2x8xf32>
      %165 = vector.shape_cast %164 : vector<2x8xf32> to vector<2x8x1xf32>
      %cst_53 = arith.constant 3.200000e+01 : f32
      %166 = vector.broadcast %cst_53 : f32 to vector<2x8x1xf32>
      %167 = arith.divf %165, %166 : vector<2x8x1xf32>
      %168 = vector.broadcast %160 : vector<2x8x1xf32> to vector<2x8x32xf32>
      %169 = arith.subf %150, %168 : vector<2x8x32xf32>
      %cst_54 = arith.constant 9.99999974E-6 : f32
      %170 = vector.broadcast %cst_54 : f32 to vector<2x8x1xf32>
      %171 = arith.addf %167, %170 : vector<2x8x1xf32>
      %172 = math.sqrt %171 : vector<2x8x1xf32>
      %173 = vector.broadcast %172 : vector<2x8x1xf32> to vector<2x8x32xf32>
      %174 = arith.divf %169, %173 : vector<2x8x32xf32>
      %175 = vector.shape_cast %19 : vector<32xf32> to vector<1x1x32xf32>
      %176 = vector.broadcast %175 : vector<1x1x32xf32> to vector<2x8x32xf32>
      %177 = arith.mulf %174, %176 : vector<2x8x32xf32>
      %178 = vector.shape_cast %21 : vector<32xf32> to vector<1x1x32xf32>
      %179 = vector.broadcast %178 : vector<1x1x32xf32> to vector<2x8x32xf32>
      %180 = arith.addf %177, %179 : vector<2x8x32xf32>
      %c0_55 = arith.constant 0 : index
      %c0_56 = arith.constant 0 : index
      %c0_57 = arith.constant 0 : index
      %181 = vector.load %arg10[%c0_55, %c0_56, %c0_57] : memref<2x8x32xf32, #tpu.memory_space<vmem>>, vector<2x8x32xf32>
      tpu.vector_store %arg10[%c0_55, %c0_56, %c0_57], %180 {strides = array<i32>} : memref<2x8x32xf32, #tpu.memory_space<vmem>>, vector<2x8x32xf32>,
    } else {
    }
    %c1_i32_48 = arith.constant 1 : i32
    %154 = arith.cmpi slt, %arg1, %c1_i32_48 : i32
    %155 = arith.extui %154 : i1 to i32
    %c0_i32_49 = arith.constant 0 : i32
    %156 = arith.cmpi ne, %155, %c0_i32_49 : i32
    scf.if %156 {
      %c0_50 = arith.constant 0 : index
      %c0_51 = arith.constant 0 : index
      %c0_52 = arith.constant 0 : index
      %157 = vector.load %arg10[%c0_50, %c0_51, %c0_52] : memref<2x8x32xf32, #tpu.memory_space<vmem>>, vector<2x8x32xf32>
      tpu.vector_store %arg10[%c0_50, %c0_51, %c0_52], %150 {strides = array<i32>} : memref<2x8x32xf32, #tpu.memory_space<vmem>>, vector<2x8x32xf32>,
    } else {
    }
    return
  }
  func.func @transform_0(%arg0: i32, %arg1: i32) -> (i32, i32, i32) {
    %c0_i32 = arith.constant 0 : i32
    %c0_i32_0 = arith.constant 0 : i32
    %c0_i32_1 = arith.constant 0 : i32
    return %arg0, %c0_i32, %c0_i32_0 : i32, i32, i32
  }
  func.func @transform_1(%arg0: i32, %arg1: i32) -> (i32, i32, i32) {
    %c0_i32 = arith.constant 0 : i32
    %c0_i32_0 = arith.constant 0 : i32
    %c0_i32_1 = arith.constant 0 : i32
    return %arg1, %c0_i32, %c0_i32_0 : i32, i32, i32
  }
  func.func @transform_2(%arg0: i32, %arg1: i32) -> (i32, i32, i32) {
    %c0_i32 = arith.constant 0 : i32
    %c0_i32_0 = arith.constant 0 : i32
    %c0_i32_1 = arith.constant 0 : i32
    return %arg1, %c0_i32, %c0_i32_0 : i32, i32, i32
  }
  func.func @transform_3(%arg0: i32, %arg1: i32) -> (i32, i32, i32) {
    %c0_i32 = arith.constant 0 : i32
    %c0_i32_0 = arith.constant 0 : i32
    %c0_i32_1 = arith.constant 0 : i32
    return %arg1, %c0_i32, %c0_i32_0 : i32, i32, i32
  }
  func.func @transform_4(%arg0: i32, %arg1: i32) -> (i32, i32, i32) {
    %c0_i32 = arith.constant 0 : i32
    %c0_i32_0 = arith.constant 0 : i32
    %c0_i32_1 = arith.constant 0 : i32
    return %arg1, %c0_i32, %c0_i32_0 : i32, i32, i32
  }
  func.func @transform_5(%arg0: i32, %arg1: i32) -> (i32, i32, i32) {
    %c0_i32 = arith.constant 0 : i32
    %c0_i32_0 = arith.constant 0 : i32
    %c0_i32_1 = arith.constant 0 : i32
    return %arg1, %c0_i32, %c0_i32_0 : i32, i32, i32
  }
  func.func @transform_6(%arg0: i32, %arg1: i32) -> (i32, i32, i32) {
    %c0_i32 = arith.constant 0 : i32
    %c0_i32_0 = arith.constant 0 : i32
    %c0_i32_1 = arith.constant 0 : i32
    return %arg1, %c0_i32, %c0_i32_0 : i32, i32, i32
  }
  func.func @transform_7(%arg0: i32, %arg1: i32) -> (i32, i32, i32) {
    %c0_i32 = arith.constant 0 : i32
    %c0_i32_0 = arith.constant 0 : i32
    %c0_i32_1 = arith.constant 0 : i32
    return %arg1, %c0_i32, %c0_i32_0 : i32, i32, i32
  }
  func.func @transform_8(%arg0: i32, %arg1: i32) -> (i32, i32, i32) {
    %c0_i32 = arith.constant 0 : i32
    %c0_i32_0 = arith.constant 0 : i32
    %c0_i32_1 = arith.constant 0 : i32
    return %arg0, %c0_i32, %c0_i32_0 : i32, i32, i32
  }
}

</mosaic_0001>

<bundles_post_ra>
// kernel: tpu_custom_call.1
= control target key start
LH: loop header
LB: loop body
LE: loop exit
PB: predicated region body
PF: predicated region fallthrough
CT: control target
= control target key end

     0   :  { %s1907_s0 = inlined_call_operand.vmem [shape: f32[2,8,32], index: 0, kind: input, shape index: {}]   ;;  %s1908_s1 = inlined_call_operand.vmem [shape: f32[2,8,32], index: 1, kind: input, shape index: {}]   ;;  %s1909_s2 = inlined_call_operand.vmem [shape: bf16[2,32,96], index: 2, kind: input, shape index: {}]   ;;  %s1910_s3 = inlined_call_operand.vmem [shape: f32[2,1,96], index: 3, kind: input, shape index: {}]   ;;  %s1911_s4 = inlined_call_operand.vmem [shape: bf16[2,32,32], index: 4, kind: input, shape index: {}]   ;;  %s1912_s5 = inlined_call_operand.vmem [shape: bf16[2,32,128], index: 5, kind: input, shape index: {}]   ;;  %s1913_s6 = inlined_call_operand.vmem [shape: f32[2,1,128], index: 6, kind: input, shape index: {}]   ;;  %s1914_s7 = inlined_call_operand.vmem [shape: bf16[2,128,32], index: 7, kind: input, shape index: {}]   ;;  %s1915_s8 = inlined_call_operand.hbm [shape: f32[2,8,32], index: 8, kind: output, shape index: {}]  }
   0x1   :  { %1916 = sst [smem:[#allocation5_spill]] %s1908_s1 }
   0x2   :  { %13 = vsyncpa [#allocation3], 0  ;;  %s1666_s27 = smov 0   ;;  %s1668_s28 = smov 0  }
   0x3   :  { %s1670_s29 = smov 0  }
   0x4 LB: > { %s28_s9 = sadd.s32 1, %s1608_s28  ;;  %p1335_p1 = scmp.ge.s32.totalorder %s1612_s29, 1  ;;  %s1612_s29 = sphi %s1670_s29, %s19_s29   ;;  %s1608_s28 = sphi %s1668_s28, %s1921_s28   ;;  %s1604_s27 = sphi %s1666_s27, %s1920_s27  }
   0x5   : > { %p29_p0 = scmp.ge.s32.totalorder %s28_s9, 2  ;;  %p341_p2 = scmp.lt.s32.totalorder %s1612_s29, 3 }
   0x7   : > { %s1923_s9 = smov (%p29_p0, %s28_s9), 0  ;;  %p342_p3 = pnand %p1335_p1, %p341_p2 }
   0x8   : > { %p406_p4 = scmp.lt.s32.totalorder (!%p342_p3), %s1604_s27, 1  ;;  %s1917_s1 = sld [smem:[#allocation5_spill]] (!%p342_p3) }
   0x9   : > { %345 = sbr.rel (%p342_p3) target bundleno = 2825 (0xb09), region = 52  ;;  %p1345_p5 = scmp.ne.s32.totalorder (!%p342_p3), %s1604_s27, 0 }
  0x10   : > { %s1689_s10 = scalar_select %p406_p4, %s1604_s27, 1 }
  0x11   : > { %441 = sbr.rel (%p1345_p5) target bundleno = 24 (0x18), region = 56  ;;  %v442_v0 = vld [vmem:[%s1907_s0] sm:$0xff] (!%p1345_p5)  ;;  %vm444_vm0 = vcmask (!%p1345_p5), 261120   ;;  %v443_v1 = vld [vmem:[%s1907_s0 + $0x8] sm:$0xff] (!%p1345_p5) }
  0x12   : > { %s1336_s11 = sshll.u32 %s1689_s10, 3  ;;  %s1375_s12 = sshll.u32 %s1689_s10, 4  ;;  %445 = vst.msk [vmem:[#allocation2] sm:$0xff] (!%p1345_p5), %vm444_vm0, %v442_v0  ;;  %446 = vst.msk [vmem:[#allocation2 + $0x8] sm:$0xff] (!%p1345_p5), %vm444_vm0, %v443_v1 }
  0x13   : > { %s1696_s15 = scalar_lea.vmem %s1917_s1, %s1336_s11  ;;  %s1701_s18 = scalar_lea.vmem %s1909_s2, %s1375_s12 }
  0x14   : > { %s417_s21 = scalar_lea.vmem %s1910_s3, %s1689_s10  ;;  %s1710_s24 = scalar_lea.vmem %s1911_s4, %s1375_s12 }
  0x15   : > { %s1715_s13 = scalar_lea.vmem %s1912_s5, %s1375_s12  ;;  %s430_s16 = scalar_lea.vmem %s1913_s6, %s1689_s10 }
  0x16   : > { %s1378_s17 = sshll.u32 %s1689_s10, 6 }
  0x17   : > { %s1725_s19 = scalar_lea.vmem %s1914_s7, %s1378_s17 }
  0x18 PF: > { %vm450_vm1 = vcmask 261120   ;;  %v1510_v16 = vld [vmem:[%s1701_s18] sm:$0xff]   ;;  %v1614_v17 = vmov 0.0   ;;  %vm1615_vm2 = vmmov 0   ;;  %v1511_v18 = vld [vmem:[%s1701_s18 + $0x8] sm:$0xff]   ;;  %v492_v31 = vlaneseq  ;;  %s1617_s18 = smov 64  }
  0x19   : > { %v1734_v2 = vld [vmem:[#allocation2] sm:$0xff]  ;;  %v1736_v3 = vld [vmem:[#allocation2 + $0x8] sm:$0xff]  ;;  %1405 = vmatprep.subr.bf16.mxu0 %v1614_v17  ;;  %1409 = vmatprep.mubr.msk.bf16.mxu0 %vm1615_vm2, %v1614_v17  ;;  %vm685_vm8 = vcmask 64512   ;;  %vm715_vm9 = vcmask 1043456   ;;  %p1369_p6 = scmp.ne.s32.totalorder %s1604_s27, 1 }
  0x1a   : > { %v451_v4 = vsel %vm450_vm1, %v1734_v2, 0.0  ;;  %v454_v5 = vsel %vm450_vm1, %v1736_v3, 0.0  ;;  %1406 = vmatpush3.bf16.msra.mxu0 %v1510_v16  ;;  %1425 = vmatprep.subr.bf16.mxu1 %v1614_v17  ;;  %v1756_v36 = vshrl.u32 %v492_v31, 7  ;;  %v1760_v38 = vld [vmem:[%s1696_s15] sm:$0xff]  ;;  %s1616_s15 = smov 96  }
  0x1b   : > { %452 = vadd.xlane.f32.xlu0 %v451_v4  ;;  %1407 = vmatprep.subr.bf16.mxu0 %v1614_v17  ;;  %v1346_v51 = vld [vmem:[%s417_s21] ss:$0 sm:$0xff] }
  0x1c   : > { %1427 = vmatprep.mubr.msk.bf16.mxu1 %vm1615_vm2, %v1614_v17  ;;  %v494_v37 = vsub.s32 0, %v1756_v36  ;;  %v500_v42 = vsub.s32 1, %v1756_v36 }
  0x1e   : > { %1408 = vmatpush3.bf16.msra.mxu0 %v1511_v18  ;;  %v495_v41 = vrot.slane %v1760_v38, %v494_v37  ;;  %v501_v46 = vrot.slane %v1760_v38, %v500_v42 }
  0x1f   : > { %455 = vadd.xlane.f32.xlu0 %v454_v5  ;;  %1413 = vmatprep.subr.bf16.mxu0 %v1614_v17 }
  0xa8   : > { %v453_v6 = vpop.xlane.xlu0 %452 }
  0xa9   : > { %v458_v7 = vmul.f32 0.03125, %v453_v6  ;;  %v679_v6 = vand.u32 127, %v492_v31 }
  0xab   : > { %v460_v8 = vsub.f32 %v1734_v2, %v458_v7  ;;  %vm680_vm7 = vcmp.gt.s32.totalorder %v679_v6, %v1756_v36 }
  0xac   : > { %v456_v9 = vpop.xlane.xlu0 %455 }
  0xad   : > { %v459_v10 = vmul.f32 0.03125, %v456_v9  ;;  %v462_v11 = vmul.f32 %v460_v8, %v460_v8 }
  0xaf   : > { %v461_v12 = vsub.f32 %v1736_v3, %v459_v10  ;;  %v464_v13 = vsel %vm450_vm1, %v462_v11, 0.0 }
  0xb0   : > { %465 = vadd.xlane.f32.xlu1 %v464_v13 }
  0xb1   : > { %v463_v14 = vmul.f32 %v461_v12, %v461_v12 }
  0xb3   : > { %v467_v15 = vsel %vm450_vm1, %v463_v14, 0.0 }
  0xb4   : > { %468 = vadd.xlane.f32.xlu1 %v467_v15 }
 0x13d   : > { %v466_v19 = vpop.xlane.xlu1 %465 }
 0x13e   : > { %v470_v20 = vmul.f32 0.03125, %v466_v19 }
 0x140   : > { %v472_v21 = vadd.f32 1e-05, %v470_v20 }
 0x141   : > { %v469_v22 = vpop.xlane.xlu1 %468 }
 0x142   : > { %1524 = vrsqrt.f32 %v472_v21  ;;  %v471_v23 = vmul.f32 0.03125, %v469_v22  ;;  %vm476_vm3 = vcmp.eq.f32.partialorder %v472_v21, inf  ;;  %v479_v27 = vand.u32 2147483648, %v472_v21 }
 0x143   : > { %vm478_vm4 = vcmp.eq.f32.partialorder %v472_v21, 0.0 }
 0x144   : > { %v473_v24 = vadd.f32 1e-05, %v471_v23 }
 0x146   : > { %1526 = vrsqrt.f32 %v473_v24  ;;  %vm483_vm5 = vcmp.eq.f32.partialorder %v473_v24, inf  ;;  %v486_v33 = vand.u32 2147483648, %v473_v24  ;;  %vm485_vm6 = vcmp.eq.f32.partialorder %v473_v24, 0.0 }
 0x14c   : > { %v1525_v25 = vpop.eup %1524 }
 0x14d   : > { %v475_v26 = vmul.f32 %v1525_v25, %v472_v21 }
 0x14f   : > { %v477_v28 = vsel %vm476_vm3, %v472_v21, %v475_v26 }
 0x150   : > { %v480_v29 = vsel %vm478_vm4, %v479_v27, %v477_v28  ;;  %v1527_v30 = vpop.eup %1526 }
 0x151   : > { %1528 = vrcp.f32 %v480_v29  ;;  %v482_v32 = vmul.f32 %v1527_v30, %v473_v24 }
 0x153   : > { %v484_v34 = vsel %vm483_vm5, %v473_v24, %v482_v32 }
 0x154   : > { %v487_v35 = vsel %vm485_vm6, %v486_v33, %v484_v34 }
 0x155   : > { %1530 = vrcp.f32 %v487_v35 }
 0x15b   : > { %v1529_v39 = vpop.eup %1528 }
 0x15c   : > { %v489_v40 = vmul.f32 %v1529_v39, %v460_v8 }
 0x15e   : > { %v496_v45 = vmul.f32 %v495_v41, %v489_v40 }
 0x15f   : > { %v1531_v43 = vpop.eup %1530 }
 0x160   : > { %v491_v44 = vmul.f32 %v1531_v43, %v461_v12  ;;  %v502_v48 = vadd.f32 %v501_v46, %v496_v45  ;;  %v1513_v45 = vld [vmem:[%s1710_s24 + $0x8] sm:$0xff]  }
 0x162   : > { %v497_v47 = vmul.f32 %v495_v41, %v491_v44  ;;  %v1512_v44 = vld [vmem:[%s1710_s24] sm:$0xff]  }
 0x164   : > { %v503_v49 = vadd.f32 %v501_v46, %v497_v47 }
 0x166   : > { %v504_v50 = vpack.c.bf16 %v503_v49, %v502_v48 }
 0x168   : > { %1410 = vmatmul.mubr.msk.bf16.vlgmr.msra.gmra.mrb[0].mxu0 %vm450_vm1, %v504_v50 }
 0x169   : > { %1415 = vmatprep.mubr.msk.bf16.mxu0 %vm1615_vm2, %v1614_v17 }
 0x23b   : > { %v565_v52 = vpop.f32.mrb[0].mxu0 }
 0x23c   : > { %v566_v53 = vadd.f32 %v1346_v51, %v565_v52  ;;  %v1411_v54 = vpop.f32.mrb[1].mxu0 }
 0x23d   : > { %v568_v55 = vpop.f32.mrb[2].mxu0 }
 0x23e   : > { %v576_v56 = vpack.c.bf16 %v566_v53, %v566_v53  ;;  %v569_v57 = vadd.f32 %v1346_v51, %v568_v55  ;;  %v1412_v58 = vpop.f32.mrb[3].mxu0  ;;  %v572_v62 = vmul.f32 0.17677669, %v566_v53  ;;  %v814_v55 = vsub.s32 4, %v1756_v36 }
 0x240   : > { %v577_v59 = vpack.c.bf16 %v569_v57, %v569_v57  ;;  %579 = vrot.lane.b32.xlu0 %v576_v56, %s1616_s15  ;;  %v574_v0 = vpack.c.bf16 %v572_v62, %v572_v62  ;;  %v573_v4 = vmul.f32 0.17677669, %v569_v57 }
 0x242   : > { %628 = vrot.lane.b32.xlu1 %v577_v59, %s1616_s15  ;;  %v575_v5 = vpack.c.bf16 %v573_v4, %v573_v4 }
 0x2b2   : > { %v580_v60 = vpop.permute.xlu0 %579 }
 0x2b3   : > { %v585_v61 = vsel %vm450_vm1, %v580_v60, 0 }
 0x2b4   : > { %1414 = vmatpush3.bf16.xpose.msra.mxu0 %v585_v61  ;;  %v629_v63 = vpop.permute.xlu1 %628 }
 0x2b5   : > { %1419 = vmatprep.subr.bf16.mxu0 %v1614_v17  ;;  %v634_v1 = vsel %vm450_vm1, %v629_v63, 0 }
 0x2bb   : > { %1416 = vmatmul.mubr.msk.bf16.vlgmr.msra.gmra.mrb[4].mxu0 %vm450_vm1, %v574_v0 }
 0x2bc   : > { %1420 = vmatpush3.bf16.xpose.msra.mxu0 %v634_v1  ;;  %1421 = vmatprep.mubr.msk.bf16.mxu0 %vm1615_vm2, %v1614_v17 }
 0x2bd   : > { %1431 = vmatprep.subr.bf16.mxu0 %v1614_v17 }
 0x2c3   : > { %1422 = vmatmul.mubr.msk.bf16.vlgmr.msra.gmra.mrb[8].mxu0 %vm450_vm1, %v575_v5 }
 0x2c4   : > { %1433 = vmatprep.mubr.msk.bf16.mxu0 %vm1615_vm2, %v1614_v17 }
 0x38e   : > { %v621_v7 = vpop.f32.mrb[4].mxu0 }
 0x38f   : > { %v683_v8 = vsel %vm680_vm7, -1e+30, %v621_v7  ;;  %v1417_v9 = vpop.f32.mrb[5].mxu0 }
 0x390   : > { %v624_v10 = vpop.f32.mrb[6].mxu0  ;;  %v686_v11 = vsel %vm685_vm8, %v683_v8, -inf }
 0x391   : > { %687 = vmax.xlane.f32.xlu1 %v686_v11  ;;  %v1418_v12 = vpop.f32.mrb[7].mxu0 }
 0x396   : > { %v670_v13 = vpop.f32.mrb[8].mxu0 }
 0x397   : > { %v684_v14 = vsel %vm680_vm7, -1e+30, %v670_v13  ;;  %v1423_v15 = vpop.f32.mrb[9].mxu0  ;;  %v1514_v13 = vld [vmem:[%s1715_s13] sm:$0xff]  }
 0x398   : > { %v673_v16 = vpop.f32.mrb[10].mxu0  ;;  %v689_v18 = vsel %vm685_vm8, %v684_v14, -inf }
 0x399   : > { %690 = vmax.xlane.f32.xlu0 %v689_v18  ;;  %v1424_v19 = vpop.f32.mrb[11].mxu0 }
 0x41e   : > { %v688_v20 = vpop.xlane.xlu1 %687 }
 0x41f   : > { %v692_v21 = vsub.f32 %v683_v8, %v688_v20 }
 0x421   : > { %v694_v22 = vmul.f32 1.442695, %v692_v21 }
 0x423   : > { %1532 = vpow2.f32 %v694_v22 }
 0x426   : > { %v691_v23 = vpop.xlane.xlu0 %690 }
 0x427   : > { %v693_v24 = vsub.f32 %v684_v14, %v691_v23  ;;  %v1515_v14 = vld [vmem:[%s1715_s13 + $0x8] sm:$0xff]  }
 0x429   : > { %v696_v25 = vmul.f32 1.442695, %v693_v24 }
 0x42b   : > { %1534 = vpow2.f32 %v696_v25 }
 0x42d   : > { %v1533_v26 = vpop.eup %1532 }
 0x42e   : > { %v698_v27 = vsel %vm685_vm8, %v1533_v26, 0.0 }
 0x42f   : > { %699 = vadd.xlane.f32.xlu0 %v698_v27 }
 0x435   : > { %v1535_v28 = vpop.eup %1534 }
 0x436   : > { %v701_v29 = vsel %vm685_vm8, %v1535_v28, 0.0 }
 0x437   : > { %702 = vadd.xlane.f32.xlu1 %v701_v29 }
 0x445   : > { %710 = vrot.lane.b32.xlu0 %v576_v56, %s1617_s18  ;;  %v815_v56 = vrot.slane %v1760_v38, %v814_v55  ;;  %v1357_v55 = vld [vmem:[%s430_s16] ss:$0 sm:$0xff] }
 0x448   : > { %759 = vrot.lane.b32.xlu1 %v577_v59, %s1617_s18 }
 0x4bc   : > { %v700_v30 = vpop.xlane.xlu0 %699 }
 0x4bd   : > { %1536 = vrcp.f32 %v700_v30 }
 0x4c0   : > { %v711_v31 = vpop.permute.xlu0 %710 }
 0x4c1   : > { %v717_v32 = vsel %vm715_vm9, %v711_v31, 0 }
 0x4c2   : > { %1426 = vmatpush3.bf16.msra.mxu1 %v717_v32  ;;  %v916_v32 = vsub.s32 2, %v1756_v36 }
 0x4c3   : > { %1437 = vmatprep.subr.bf16.mxu1 %v1614_v17 }
 0x4c4   : > { %v703_v33 = vpop.xlane.xlu1 %702 }
 0x4c5   : > { %1538 = vrcp.f32 %v703_v33 }
 0x4c7   : > { %v1537_v34 = vpop.eup %1536 }
 0x4c8   : > { %v760_v35 = vpop.permute.xlu1 %759  ;;  %v705_v37 = vmul.f32 %v1537_v34, %v1533_v26  ;;  %v917_v34 = vrot.slane %v1760_v38, %v916_v32 }
 0x4c9   : > { %v765_v39 = vsel %vm715_vm9, %v760_v35, 0  ;;  %v922_v35 = vsub.s32 3, %v1756_v36 }
 0x4ca   : > { %1432 = vmatpush3.bf16.msra.mxu0 %v765_v39  ;;  %v708_v40 = vpack.c.bf16 %v705_v37, %v705_v37 }
 0x4cb   : > { %1445 = vmatprep.subr.bf16.mxu0 %v1614_v17 }
 0x4cc   : > { %1428 = vmatmul.mubr.msk.bf16.vlgmr.msra.gmra.mrb[0].mxu1 %vm685_vm8, %v708_v40 }
 0x4cd   : > { %1441 = vmatprep.mubr.msk.bf16.mxu1 %vm1615_vm2, %v1614_v17  ;;  %1438 = vmatpush3.bf16.msra.mxu1 %v1512_v44 }
 0x4ce   : > { %1439 = vmatprep.subr.bf16.mxu1 %v1614_v17 }
 0x4cf   : > { %v1539_v41 = vpop.eup %1538 }
 0x4d0   : > { %v707_v42 = vmul.f32 %v1539_v41, %v1535_v28 }
 0x4d1   : > { %1440 = vmatpush3.bf16.msra.mxu1 %v1513_v45 }
 0x4d2   : > { %v709_v43 = vpack.c.bf16 %v707_v42, %v707_v42  ;;  %1453 = vmatprep.subr.bf16.mxu1 %v1614_v17  ;;  %v923_v42 = vrot.slane %v1760_v38, %v922_v35 }
 0x4d4   : > { %1434 = vmatmul.mubr.msk.bf16.vlgmr.msra.gmra.mrb[12].mxu0 %vm685_vm8, %v709_v43 }
 0x4d5   : > { %1449 = vmatprep.mubr.msk.bf16.mxu0 %vm1615_vm2, %v1614_v17  ;;  %1446 = vmatpush3.bf16.msra.mxu0 %v1514_v13 }
 0x4d6   : > { %1447 = vmatprep.subr.bf16.mxu0 %v1614_v17 }
 0x4d9   : > { %1448 = vmatpush3.bf16.msra.mxu0 %v1515_v14 }
 0x59f   : > { %v753_v46 = vpop.f32.mrb[0].mxu1 }
 0x5a0   : > { %v1429_v47 = vpop.f32.mrb[1].mxu1 }
 0x5a1   : > { %v756_v48 = vpop.f32.mrb[2].mxu1  ;;  %v1516_v47 = vld [vmem:[%s1725_s19] sm:$0xff]  }
 0x5a2   : > { %v1430_v49 = vpop.f32.mrb[3].mxu1  ;;  %v1517_v48 = vld [vmem:[%s1725_s19 + $0x8] sm:$0xff]  }
 0x5a3   : > { %v1518_v49 = vld [vmem:[%s1725_s19 + $0x10] sm:$0xff]  }
 0x5a7   : > { %v801_v50 = vpop.f32.mrb[12].mxu0 }
 0x5a8   : > { %v807_v51 = vpack.c.bf16 %v801_v50, %v753_v46  ;;  %v1435_v52 = vpop.f32.mrb[13].mxu0  ;;  %v1519_v50 = vld [vmem:[%s1725_s19 + $0x18] sm:$0xff]  }
 0x5a9   : > { %v804_v53 = vpop.f32.mrb[14].mxu0  ;;  %v1521_v52 = vld [vmem:[%s1725_s19 + $0x28] sm:$0xff]  }
 0x5aa   : > { %v1436_v54 = vpop.f32.mrb[15].mxu0  ;;  %1442 = vmatmul.mubr.msk.bf16.vlgmr.msra.gmra.mrb[4].mxu1 %vm450_vm1, %v807_v51  ;;  %v1520_v51 = vld [vmem:[%s1725_s19 + $0x20] sm:$0xff]   ;;  %v1522_v53 = vld [vmem:[%s1725_s19 + $0x30] sm:$0xff]  }
 0x5ab   : > { %1469 = vmatprep.mubr.msk.bf16.mxu1 %vm1615_vm2, %v1614_v17  ;;  %1454 = vmatpush3.bf16.msra.mxu1 %v1516_v47  ;;  %v1523_v54 = vld [vmem:[%s1725_s19 + $0x38] sm:$0xff]  }
 0x5ac   : > { %1455 = vmatprep.subr.bf16.mxu1 %v1614_v17 }
 0x5af   : > { %1456 = vmatpush3.bf16.msra.mxu1 %v1517_v48 }
 0x5b0   : > { %1457 = vmatprep.subr.bf16.mxu1 %v1614_v17 }
 0x5b3   : > { %1458 = vmatpush3.bf16.msra.mxu1 %v1518_v49 }
 0x5b4   : > { %1459 = vmatprep.subr.bf16.mxu1 %v1614_v17 }
 0x5b7   : > { %1460 = vmatpush3.bf16.msra.mxu1 %v1519_v50 }
 0x5b8   : > { %1461 = vmatprep.subr.bf16.mxu1 %v1614_v17 }
 0x5bb   : > { %1462 = vmatpush3.bf16.msra.mxu1 %v1520_v51 }
 0x5bc   : > { %1463 = vmatprep.subr.bf16.mxu1 %v1614_v17 }
 0x5bf   : > { %1464 = vmatpush3.bf16.msra.mxu1 %v1521_v52 }
 0x5c0   : > { %1465 = vmatprep.subr.bf16.mxu1 %v1614_v17 }
 0x5c3   : > { %1466 = vmatpush3.bf16.msra.mxu1 %v1522_v53 }
 0x5c4   : > { %1467 = vmatprep.subr.bf16.mxu1 %v1614_v17 }
 0x5c7   : > { %1468 = vmatpush3.bf16.msra.mxu1 %v1523_v54 }
 0x67d   : > { %v865_v57 = vpop.f32.mrb[4].mxu1 }
 0x67e   : > { %v866_v58 = vadd.f32 %v865_v57, %v815_v56  ;;  %v1443_v59 = vpop.f32.mrb[5].mxu1 }
 0x67f   : > { %v868_v60 = vpop.f32.mrb[6].mxu1 }
 0x680   : > { %v1806_v61 = vadd.f32 %v866_v58, %v1734_v2  ;;  %v869_v62 = vadd.f32 %v868_v60, %v815_v56  ;;  %v1444_v63 = vpop.f32.mrb[7].mxu1 }
 0x682   : > { %v1809_v0 = vadd.f32 %v869_v62, %v1736_v3  ;;  %v874_v1 = vsel %vm450_vm1, %v1806_v61, 0.0 }
 0x683   : > { %875 = vadd.xlane.f32.xlu1 %v874_v1 }
 0x684   : > { %v877_v4 = vsel %vm450_vm1, %v1809_v0, 0.0 }
 0x685   : > { %878 = vadd.xlane.f32.xlu0 %v877_v4 }
 0x710   : > { %v876_v5 = vpop.xlane.xlu1 %875 }
 0x711   : > { %v880_v6 = vmul.f32 0.03125, %v876_v5 }
 0x712   : > { %v879_v7 = vpop.xlane.xlu0 %878 }
 0x713   : > { %v882_v2 = vsub.f32 %v1806_v61, %v880_v6  ;;  %v881_v8 = vmul.f32 0.03125, %v879_v7 }
 0x715   : > { %v883_v9 = vsub.f32 %v1809_v0, %v881_v8  ;;  %v884_v3 = vmul.f32 %v882_v2, %v882_v2 }
 0x717   : > { %v886_v10 = vsel %vm450_vm1, %v884_v3, 0.0  ;;  %v885_v11 = vmul.f32 %v883_v9, %v883_v9 }
 0x718   : > { %887 = vadd.xlane.f32.xlu0 %v886_v10 }
 0x719   : > { %v889_v12 = vsel %vm450_vm1, %v885_v11, 0.0 }
 0x71a   : > { %890 = vadd.xlane.f32.xlu1 %v889_v12 }
 0x7a5   : > { %v888_v15 = vpop.xlane.xlu0 %887 }
 0x7a6   : > { %v892_v16 = vmul.f32 0.03125, %v888_v15 }
 0x7a7   : > { %v891_v18 = vpop.xlane.xlu1 %890 }
 0x7a8   : > { %v894_v19 = vadd.f32 1e-05, %v892_v16  ;;  %v893_v20 = vmul.f32 0.03125, %v891_v18 }
 0x7aa   : > { %1540 = vrsqrt.f32 %v894_v19  ;;  %v895_v21 = vadd.f32 1e-05, %v893_v20  ;;  %vm898_vm10 = vcmp.eq.f32.partialorder %v894_v19, inf  ;;  %v901_v24 = vand.u32 2147483648, %v894_v19 }
 0x7ab   : > { %vm900_vm11 = vcmp.eq.f32.partialorder %v894_v19, 0.0 }
 0x7ac   : > { %1542 = vrsqrt.f32 %v895_v21  ;;  %vm905_vm12 = vcmp.eq.f32.partialorder %v895_v21, inf  ;;  %v908_v29 = vand.u32 2147483648, %v895_v21  ;;  %vm907_vm13 = vcmp.eq.f32.partialorder %v895_v21, 0.0 }
 0x7b4   : > { %v1541_v22 = vpop.eup %1540 }
 0x7b5   : > { %v897_v23 = vmul.f32 %v1541_v22, %v894_v19 }
 0x7b6   : > { %v1543_v25 = vpop.eup %1542 }
 0x7b7   : > { %v899_v26 = vsel %vm898_vm10, %v894_v19, %v897_v23  ;;  %v904_v28 = vmul.f32 %v1543_v25, %v895_v21  ;;  %v1031_v19 = vsub.s32 5, %v1756_v36 }
 0x7b8   : > { %v902_v27 = vsel %vm900_vm11, %v901_v24, %v899_v26 }
 0x7b9   : > { %1544 = vrcp.f32 %v902_v27  ;;  %v906_v30 = vsel %vm905_vm12, %v895_v21, %v904_v28  ;;  %v1032_v20 = vrot.slane %v1760_v38, %v1031_v19 }
 0x7ba   : > { %v909_v31 = vsel %vm907_vm13, %v908_v29, %v906_v30 }
 0x7bb   : > { %1546 = vrcp.f32 %v909_v31 }
 0x7c3   : > { %v1545_v33 = vpop.eup %1544 }
 0x7c4   : > { %v911_v37 = vmul.f32 %v1545_v33, %v882_v2 }
 0x7c5   : > { %v1547_v39 = vpop.eup %1546 }
 0x7c6   : > { %v913_v40 = vmul.f32 %v1547_v39, %v883_v9  ;;  %v918_v41 = vmul.f32 %v917_v34, %v911_v37 }
 0x7c8   : > { %v919_v43 = vmul.f32 %v917_v34, %v913_v40  ;;  %v924_v44 = vadd.f32 %v923_v42, %v918_v41 }
 0x7ca   : > { %v925_v45 = vadd.f32 %v923_v42, %v919_v43 }
 0x7cc   : > { %v926_v46 = vpack.c.bf16 %v925_v45, %v924_v44 }
 0x7ce   : > { %1450 = vmatmul.mubr.msk.bf16.vlgmr.msra.gmra.mrb[16].mxu0 %vm450_vm1, %v926_v46 }
 0x8a1   : > { %v987_v56 = vpop.f32.mrb[16].mxu0 }
 0x8a2   : > { %v988_v57 = vadd.f32 %v1357_v55, %v987_v56  ;;  %v1451_v58 = vpop.f32.mrb[17].mxu0 }
 0x8a3   : > { %v990_v59 = vpop.f32.mrb[18].mxu0  ;;  %v1176_v58 = vsub.s32 (!%p1369_p6), 7, %v1756_v36 }
 0x8a4   : > { %v996_v60 = vmul.f32 %v988_v57, %v988_v57  ;;  %v991_v62 = vadd.f32 %v1357_v55, %v990_v59  ;;  %v1452_v63 = vpop.f32.mrb[19].mxu0  ;;  %v994_v12 = vmul.f32 0.5, %v988_v57 }
 0x8a6   : > { %v998_v1 = vmul.f32 %v996_v60, %v988_v57  ;;  %v997_v4 = vmul.f32 %v991_v62, %v991_v62  ;;  %v995_v13 = vmul.f32 0.5, %v991_v62 }
 0x8a8   : > { %v1000_v5 = vmul.f32 0.044715, %v998_v1  ;;  %v999_v6 = vmul.f32 %v997_v4, %v991_v62 }
 0x8aa   : > { %v1002_v7 = vadd.f32 %v1000_v5, %v988_v57  ;;  %v1001_v2 = vmul.f32 0.044715, %v999_v6  ;;  %v1170_v57 = vsub.s32 (!%p1369_p6), 6, %v1756_v36 }
 0x8ac   : > { %v1004_v17 = vmul.f32 0.7978845, %v1002_v7  ;;  %v1003_v8 = vadd.f32 %v1001_v2, %v991_v62  ;;  %v1171_v59 = vrot.slane (!%p1369_p6), %v1760_v38, %v1170_v57  ;;  %v1177_v62 = vrot.slane (!%p1369_p6), %v1760_v38, %v1176_v58 }
 0x8ae   : > { %1548 = vtanh.f32 %v1004_v17  ;;  %v1005_v9 = vmul.f32 0.7978845, %v1003_v8 }
 0x8b0   : > { %1550 = vtanh.f32 %v1005_v9 }
 0x8b8   : > { %v1549_v3 = vpop.eup %1548 }
 0x8b9   : > { %v1008_v10 = vadd.f32 1.0, %v1549_v3 }
 0x8ba   : > { %v1551_v11 = vpop.eup %1550 }
 0x8bb   : > { %v1009_v14 = vadd.f32 1.0, %v1551_v11  ;;  %v1010_v15 = vmul.f32 %v1008_v10, %v994_v12 }
 0x8bd   : > { %v1011_v16 = vmul.f32 %v1009_v14, %v995_v13 }
 0x8bf   : > { %v1012_v18 = vpack.c.bf16 %v1011_v16, %v1010_v15 }
 0x8c1   : > { %1470 = vmatmul.mubr.bf16.vlgmr.msra.gmra.mrb[8].mxu1 %v1012_v18 }
 0x993   : > { %1127 = sbr.rel (%p1369_p6) target bundleno = 2790 (0xae6), region = 60 }
 0x994   : > { %v1115_v21 = vpop.f32.mrb[8].mxu1 }
 0x995   : > { %v1116_v22 = vadd.f32 %v1115_v21, %v1032_v20  ;;  %v1471_v23 = vpop.f32.mrb[9].mxu1 }
 0x996   : > { %v1118_v24 = vpop.f32.mrb[10].mxu1 }
 0x997   : > { %v1850_v25 = vadd.f32 %v1116_v22, %v1806_v61  ;;  %v1119_v26 = vadd.f32 %v1118_v24, %v1032_v20  ;;  %v1472_v27 = vpop.f32.mrb[11].mxu1 }
 0x999   : > { %v1123_v28 = vadd.f32 %v1119_v26, %v1809_v0  ;;  %v1128_v29 = vsel (!%p1369_p6), %vm450_vm1, %v1850_v25, 0.0 }
 0x99a   : > { %1129 = vadd.xlane.f32.xlu0 %v1128_v29 }
 0x99b   : > { %v1131_v30 = vsel %vm450_vm1, %v1123_v28, 0.0 }
 0x99e   : > { %1132 = vadd.xlane.f32.xlu0 %v1131_v30 }
 0xa27   : > { %v1130_v31 = vpop.xlane.xlu0 %1129 }
 0xa28   : > { %v1134_v32 = vmul.f32 0.03125, %v1130_v31 }
 0xa2a   : > { %v1136_v33 = vsub.f32 %v1850_v25, %v1134_v32 }
 0xa2b   : > { %v1133_v61 = vpop.xlane.xlu0 %1132 }
 0xa2c   : > { %v1135_v34 = vmul.f32 0.03125, %v1133_v61  ;;  %v1138_v35 = vmul.f32 %v1136_v33, %v1136_v33 }
 0xa2e   : > { %v1137_v37 = vsub.f32 %v1123_v28, %v1135_v34  ;;  %v1140_v0 = vsel %vm450_vm1, %v1138_v35, 0.0 }
 0xa2f   : > { %1141 = vadd.xlane.f32.xlu1 %v1140_v0 }
 0xa30   : > { %v1139_v39 = vmul.f32 %v1137_v37, %v1137_v37 }
 0xa32   : > { %v1143_v40 = vsel %vm450_vm1, %v1139_v39, 0.0 }
 0xa33   : > { %1144 = vadd.xlane.f32.xlu1 %v1143_v40 }
 0xabc   : > { %v1142_v41 = vpop.xlane.xlu1 %1141 }
 0xabd   : > { %v1146_v42 = vmul.f32 0.03125, %v1142_v41 }
 0xabf   : > { %v1148_v43 = vadd.f32 1e-05, %v1146_v42 }
 0xac0   : > { %v1145_v44 = vpop.xlane.xlu1 %1144 }
 0xac1   : > { %1552 = vrsqrt.f32 %v1148_v43  ;;  %v1147_v45 = vmul.f32 0.03125, %v1145_v44  ;;  %vm1152_vm14 = vcmp.eq.f32.partialorder %v1148_v43, inf  ;;  %v1155_v49 = vand.u32 2147483648, %v1148_v43 }
 0xac2   : > { %vm1154_vm15 = vcmp.eq.f32.partialorder %v1148_v43, 0.0 }
 0xac3   : > { %v1149_v46 = vadd.f32 1e-05, %v1147_v45 }
 0xac5   : > { %1554 = vrsqrt.f32 %v1149_v46  ;;  %vm1159_vm0 = vcmp.eq.f32.partialorder %v1149_v46, inf  ;;  %v1162_v54 = vand.u32 2147483648, %v1149_v46  ;;  %vm1161_vm2 = vcmp.eq.f32.partialorder %v1149_v46, 0.0 }
 0xacb   : > { %v1553_v47 = vpop.eup %1552 }
 0xacc   : > { %v1151_v48 = vmul.f32 %v1553_v47, %v1148_v43 }
 0xace   : > { %v1153_v50 = vsel %vm1152_vm14, %v1148_v43, %v1151_v48 }
 0xacf   : > { %v1156_v51 = vsel %vm1154_vm15, %v1155_v49, %v1153_v50  ;;  %v1555_v52 = vpop.eup %1554 }
 0xad0   : > { %1556 = vrcp.f32 %v1156_v51  ;;  %v1158_v53 = vmul.f32 %v1555_v52, %v1149_v46 }
 0xad2   : > { %v1160_v55 = vsel %vm1159_vm0, %v1149_v46, %v1158_v53 }
 0xad3   : > { %v1163_v56 = vsel %vm1161_vm2, %v1162_v54, %v1160_v55 }
 0xad4   : > { %1558 = vrcp.f32 %v1163_v56 }
 0xada   : > { %v1557_v60 = vpop.eup %1556 }
 0xadb   : > { %v1165_v63 = vmul.f32 %v1557_v60, %v1136_v33 }
 0xadd   : > { %v1172_v1 = vmul.f32 %v1171_v59, %v1165_v63 }
 0xade   : > { %v1559_v4 = vpop.eup %1558 }
 0xadf   : > { %v1178_v5 = vadd.f32 %v1177_v62, %v1172_v1  ;;  %v1167_v6 = vmul.f32 %v1559_v4, %v1137_v37 }
 0xae1   : > { %1180 = vst.msk [vmem:[#allocation2] sm:$0xff] %vm450_vm1, %v1178_v5  ;;  %v1173_v7 = vmul.f32 %v1171_v59, %v1167_v6 }
 0xae3   : > { %v1179_v2 = vadd.f32 %v1177_v62, %v1173_v7 }
 0xae5   : > { %1181 = vst.msk [vmem:[#allocation2 + $0x8] sm:$0xff] %vm450_vm1, %v1179_v2 }
 0xae6 PF: > { %p1370_p7 = scmp.ge.s32.totalorder %s1604_s27, 1 }
 0xae7   : > { %1186 = vst.msk [vmem:[#allocation2] sm:$0xff] (!%p1370_p7), %vm450_vm1, %v1850_v25  ;;  %1187 = vst.msk [vmem:[#allocation2 + $0x8] sm:$0xff] (!%p1370_p7), %vm450_vm1, %v1123_v28 }
 0xae8   : > { %1185 = sbr.rel (%p1370_p7) target bundleno = 2799 (0xaef), region = 64 }
 0xaef PF: > { %s1918_s10 = sadd.s32 4294967295, %s1612_s29   ;;  %s1618_s26 = smov [#allocation2]  }
 0xaf0   : > { %p1872_p8 = scmp.eq.s32.totalorder %s1918_s10, 1  ;;  %s1197_s13 = sshll.u32 %s1618_s26, 4  ;;  %s1198_s13 = int_to_ptr.vmem [resolvable:$true] %s1197_s13 }
 0xaf1   : > { %s1560_s11 = scalar_lea.vmem %s1198_s13, 256  ;;  %p1567_p12 = scmp.lt.s32.totalorder %s1198_s13, %s1198_s13 }
 0xaf2   : > { %p1561_p9 = scmp.ne.s32.totalorder %s1198_s13, %s1560_s11  ;;  %p1568_p13 = scmp.lt.s32.totalorder %s1560_s11, %s1560_s11 }
 0xaf4   : > { %p1562_p10 = pnand %p1561_p9, %p1872_p8  ;;  %p1569_p0 = por %p1568_p13, %p1567_p12 }
 0xaf6   : > { %p1563_p11 = pneg %p1562_p10 }
 0xaf8   : > { %p1570_p1 = pnand %p1569_p0, %p1563_p11 }
 0xafa   : > { %1573 = shalt.err (!%p1570_p1)
}
 0xafb   : > { %s1574_s16 = scalar_lea.hbm %s1915_s8, 256 }
 0xafc   : > { %p1575_p2 = scmp.ne.s32.totalorder %s1915_s8, %s1574_s16  ;;  %p1580_p5 = scmp.lt.u32.totalorder %s1574_s16, %s1915_s8 }
 0xafe   : > { %p1576_p3 = pnand %p1575_p2, %p1872_p8 }
 0xb00   : > { %p1577_p4 = pneg %p1576_p3 }
 0xb02   : > { %p1582_p6 = pnand %p1580_p5, %p1577_p4 }
 0xb04   : > { %1585 = shalt.err (!%p1582_p6)
}
 0xb05   : > { %s1619_s12 = smov 128   ;;  %s1620_s23 = smov 8  }
 0xb06   : > { %1474 = dma.vmem_to_hbm [thread:$0]  (%p1872_p8), %s1198_s13, 256, %s1915_s8, [#allocation3], %s1619_s12, %s1619_s12, %s1620_s23  }
 0xb07   : > { %1599 = dma.done.wait (%p1872_p8), [#allocation3], 256  }
 0xb08   : > { %1601 = vsyncadd (%p1872_p8), [#allocation3], 4294967040 }
 0xb09 PF: > { %s19_s29 = sadd.s32 1, %s1612_s29   ;;  %s1920_s27 = smov %s1608_s28 }
 0xb0a   : > { %p16_p7 = scmp.ge.s32.totalorder %s19_s29, 4   ;;  %s1921_s28 = smov %s1923_s9 }
 0xb0c   :  { %18 = sbr.rel (!%p16_p7) target bundleno = 4 (0x4), region = 113 }
 0xb13   :  { %1213 = vsyncpa [#allocation3], 1 }
 0xb14   :  { %1215 = vsyncpa [#allocation3 + $0x1], 1 }

</bundles_post_ra>
